<compile_context>
chip_gen: v5e
topology: v5e:2x2
jax: 0.10.0
libtpu: 0.0.40
codegen_flags: <defaults>
</compile_context>

<pallas_src>
import functools
import math

import jax
import jax.numpy as jnp
from jax.experimental import pallas as pl
from jax.experimental.pallas import tpu as pltpu

_LANES = 128
_SUBLANES = 8


def _round_up(x: int, m: int) -> int:
    return ((x + m - 1) // m) * m


def _vmem_budget_and_limit():
    """(working-set budget, vmem_limit_bytes), chip-aware with safe fallback."""
    phys = 64 * 1024 * 1024  # conservative (v7x-sized) fallback
    try:
        info = pltpu.get_tpu_info()
        phys = int(getattr(info, "vmem_capacity_bytes", phys))
    except Exception:
        pass
    # ~half of physical for the pipelined working set; leaves headroom for
    # compiler scratch, semaphores and the (tiny) weight / segment-matrix blocks.
    budget = max(8 << 20, min(phys // 2, 64 << 20))
    limit = int(min(budget + (12 << 20), int(phys * 0.8)))
    return budget, limit


def _pick_row_tile(n_rows: int, row_width: int, itemsize: int, budget: int) -> int:
    """Largest row tile fitting the VMEM budget (incl. in-kernel f32 temps),
    capped at 512 rows, with >= ~8 grid steps when rows allow."""
    # 2x double-buffered input + 2x double-buffered output tiles (I/O dtype)
    # plus ~2 f32-width temporaries materialized inside the kernel body.
    per_row_bytes = 4 * row_width * itemsize + 2 * row_width * 4
    tm = budget // max(per_row_bytes, 1)
    tm = int(min(tm, 512))
    tm = max(_SUBLANES, (tm // _SUBLANES) * _SUBLANES)
    if n_rows >= 8 * _SUBLANES:
        # >= ~8 grid steps: pipeline prologue/epilogue amortization and
        # several steps per v7x TensorCore under megacore sharding.
        tm = min(tm, _round_up(pl.cdiv(n_rows, 8), _SUBLANES))
    if tm >= n_rows:
        return n_rows  # single block; block dim == full array dim is allowed
    return tm


def _rmsnorm_kernel(x_ref, w_ref, o_ref, *, eps: float):
    """Dense path: one logical row per kernel row. Block = (tm, d_model)."""
    x32 = x_ref[...].astype(jnp.float32)                       # (tm, D)
    ms = jnp.mean(x32 * x32, axis=-1, keepdims=True)            # (tm, 1)  XLU
    inv = jax.lax.rsqrt(ms + eps)                                # EUP
    o_ref[...] = (x32 * inv * w_ref[...].astype(jnp.float32)).astype(o_ref.dtype)


def _rmsnorm_packed_kernel(x_ref, w_ref, s_ref, st_ref, o_ref, *,
                           eps: float, d_model: int):
    """Lane-dense path for small d_model: `pack` logical rows per kernel row.

    Per-logical-row sum-of-squares and its broadcast back to full width are
    two tiny matmuls against a static 0/1 block-diagonal matrix on the MXU
    (which is otherwise idle), keeping the VPU/XLU free and the DMA stream
    the binding unit.
    """
    x32 = x_ref[...].astype(jnp.float32)                         # (tm, width)
    w32 = w_ref[...].astype(jnp.float32)                         # (1, width)
    seg_ss = jnp.dot(x32 * x32, s_ref[...],
                     preferred_element_type=jnp.float32)         # (tm, pack)
    inv = jax.lax.rsqrt(seg_ss * (1.0 / d_model) + eps)          # (tm, pack)
    inv_full = jnp.dot(inv, st_ref[...],
                       preferred_element_type=jnp.float32)       # (tm, width)
    o_ref[...] = (x32 * inv_full * w32).astype(o_ref.dtype)


def rmsnorm(x: jax.Array, weight: jax.Array, eps: float = 1e-5) -> jax.Array:
    """RMSNorm over the last axis. x: (..., d_model), weight: (d_model,)."""
    orig_shape = x.shape
    d_model = int(orig_shape[-1])
    assert weight.shape == (d_model,), "weight must be (d_model,)"
    if x.size == 0:
        return x

    rows = math.prod(int(s) for s in orig_shape[:-1]) if len(orig_shape) > 1 else 1
    itemsize = jnp.dtype(x.dtype).itemsize
    budget, vmem_limit = _vmem_budget_and_limit()

    # Lane-dense packing for small d_model: pack several logical rows into one
    # (up to) 128-lane kernel row so HBM-facing loads/stores are not heavily
    # lane-masked. Halve the pack factor until it divides the row count; the
    # reshape below is a contiguous no-op, so packing is free.
    pack = 1
    if 8 <= d_model < _LANES and _LANES % d_model == 0:
        p = _LANES // d_model
        while p > 1 and rows % p != 0:
            p //= 2
        pack = p
    # TODO(synk): d_model < 128 that does not divide 128 still takes the
    # lane-masked dense path (would need lane padding to pack).

    row_width = pack * d_model
    n_rows = rows // pack
    x2d = x.reshape(n_rows, row_width)
    w_row = (weight if pack == 1 else jnp.tile(weight, pack)).reshape(1, row_width)

    tm = _pick_row_tile(n_rows, row_width, itemsize, budget)
    grid = pl.cdiv(n_rows, tm)  # ragged final block is masked by Pallas

    x_spec = pl.BlockSpec((tm, row_width), lambda i: (i, 0))
    w_spec = pl.BlockSpec((1, row_width), lambda i: (0, 0))
    out_spec = pl.BlockSpec((tm, row_width), lambda i: (i, 0))

    params = pltpu.CompilerParams(
        dimension_semantics=("parallel",),
        vmem_limit_bytes=vmem_limit,
    )

    if pack == 1:
        kernel = functools.partial(_rmsnorm_kernel, eps=float(eps))
        in_specs = [x_spec, w_spec]
        operands = (x2d, w_row)
    else:
        # Static 0/1 block-diagonal segment matrix S (width x pack) and S^T.
        seg = jnp.repeat(jnp.arange(pack, dtype=jnp.int32), d_model)
        s_mat = (seg[:, None] == jnp.arange(pack, dtype=jnp.int32)[None, :]
                 ).astype(jnp.float32)
        kernel = functools.partial(_rmsnorm_packed_kernel, eps=float(eps),
                                   d_model=d_model)
        in_specs = [x_spec, w_spec,
                    pl.BlockSpec((row_width, pack), lambda i: (0, 0)),
                    pl.BlockSpec((pack, row_width), lambda i: (0, 0))]
        operands = (x2d, w_row, s_mat, s_mat.T)

    out = pl.pallas_call(
        kernel,
        out_shape=jax.ShapeDtypeStruct((n_rows, row_width), x.dtype),
        grid_spec=pltpu.PrefetchScalarGridSpec(
            num_scalar_prefetch=0,
            grid=(grid,),
            in_specs=in_specs,
            out_specs=out_spec,
        ),
        compiler_params=params,
    )(*operands)

    return out.reshape(orig_shape)


if __name__ == "__main__":
    key = jax.random.PRNGKey(0)
    eps = 1e-5

    def _ref(x, w):
        x32 = x.astype(jnp.float32)
        y = x32 * jax.lax.rsqrt(jnp.mean(x32 * x32, axis=-1, keepdims=True) + eps) * w
        return y.astype(x.dtype)

    k1, k2, k3, k4, k5 = jax.random.split(key, 5)

    # Case 1: small d_model, full lane packing (pack=4, width=128), MXU path.
    x1 = jax.random.normal(k1, (2, 8, 32), dtype=jnp.float32)
    w1 = jnp.ones((32,), dtype=jnp.float32)      # nn.Parameter(torch.ones(d_model))
    o1 = rmsnorm(x1, w1, eps)
    jax.block_until_ready(o1)
    assert o1.shape == x1.shape and o1.dtype == x1.dtype
    assert jnp.allclose(o1, _ref(x1, w1), atol=1e-4, rtol=1e-4)

    # Case 2: lane-aligned d_model, dense path, single full block.
    x2 = jax.random.normal(k2, (2, 4, 128), dtype=jnp.float32)
    w2 = jax.random.normal(k5, (128,), dtype=jnp.float32)
    o2 = rmsnorm(x2, w2, eps)
    jax.block_until_ready(o2)
    assert o2.shape == x2.shape and o2.dtype == x2.dtype
    assert jnp.allclose(o2, _ref(x2, w2), atol=1e-4, rtol=1e-4)

    # Case 3: many rows -> multi-step grid with a ragged (masked) final block.
    x3 = jax.random.normal(k3, (4, 40, 128), dtype=jnp.float32)
    w3 = jnp.ones((128,), dtype=jnp.float32)
    o3 = rmsnorm(x3, w3, eps)
    jax.block_until_ready(o3)
    assert o3.shape == x3.shape and o3.dtype == x3.dtype
    assert jnp.allclose(o3, _ref(x3, w3), atol=1e-4, rtol=1e-4)

    # Case 4: bf16 input with partial packing (d=32, rows=18 -> pack=2).
    x4 = jax.random.normal(k4, (3, 6, 32), dtype=jnp.float32).astype(jnp.bfloat16)
    w4 = jnp.ones((32,), dtype=jnp.float32)
    o4 = rmsnorm(x4, w4, eps)
    jax.block_until_ready(o4)
    assert o4.shape == x4.shape and o4.dtype == x4.dtype
    assert jnp.allclose(o4.astype(jnp.float32), _ref(x4, w4).astype(jnp.float32),
                        atol=3e-2, rtol=3e-2)

    print("KERNEL_OK")
</pallas_src>

<mosaic_0001>
module attributes {stable_mosaic.version = 11 : i64} {
  func.func @_rmsnorm_packed_kernel(%arg0: i32, %arg1: memref<4x128xf32, #tpu.memory_space<vmem>>, %arg2: memref<1x128xf32, #tpu.memory_space<vmem>>, %arg3: memref<128x4xf32, #tpu.memory_space<vmem>>, %arg4: memref<4x128xf32, #tpu.memory_space<vmem>>, %arg5: memref<4x128xf32, #tpu.memory_space<vmem>>) attributes {dimension_semantics = [#tpu.dimension_semantics<parallel>], iteration_bounds = array<i64: 1>, scalar_prefetch = 0 : i64, scratch_operands = 0 : i64, tpu.core_type = #tpu.core_type<tc>, window_params = [{transform_indices = @transform_0, window_bounds = array<i64: 4, 128>}, {pipeline_mode = #tpu.pipeline_mode<synchronous>, transform_indices = @transform_1, window_bounds = array<i64: 1, 128>}, {pipeline_mode = #tpu.pipeline_mode<synchronous>, transform_indices = @transform_2, window_bounds = array<i64: 128, 4>}, {pipeline_mode = #tpu.pipeline_mode<synchronous>, transform_indices = @transform_3, window_bounds = array<i64: 4, 128>}, {transform_indices = @transform_4, window_bounds = array<i64: 4, 128>}]} {
    %c0 = arith.constant 0 : index
    %c0_0 = arith.constant 0 : index
    %0 = vector.load %arg1[%c0, %c0_0] : memref<4x128xf32, #tpu.memory_space<vmem>>, vector<4x128xf32>
    %c0_1 = arith.constant 0 : index
    %c0_2 = arith.constant 0 : index
    %1 = vector.load %arg2[%c0_1, %c0_2] : memref<1x128xf32, #tpu.memory_space<vmem>>, vector<1x128xf32>
    %2 = arith.mulf %0, %0 : vector<4x128xf32>
    %c0_3 = arith.constant 0 : index
    %c0_4 = arith.constant 0 : index
    %3 = vector.load %arg3[%c0_3, %c0_4] : memref<128x4xf32, #tpu.memory_space<vmem>>, vector<128x4xf32>
    %cst = arith.constant dense<0.000000e+00> : vector<4x4xf32>
    %4 = tpu.matmul %2, %3, %cst {dimension_numbers = #tpu.dot_dimension_numbers<[1], [0], [0], [1], [0, 0, 1, 1], [], []>} : vector<4x128xf32>, vector<128x4xf32>, vector<4x4xf32> -> vector<4x4xf32>
    %cst_5 = arith.constant 3.125000e-02 : f32
    %5 = vector.broadcast %cst_5 : f32 to vector<4x4xf32>
    %6 = arith.mulf %4, %5 : vector<4x4xf32>
    %cst_6 = arith.constant 9.99999974E-6 : f32
    %7 = vector.broadcast %cst_6 : f32 to vector<4x4xf32>
    %8 = arith.addf %6, %7 : vector<4x4xf32>
    %9 = math.rsqrt %8 : vector<4x4xf32>
    %c0_7 = arith.constant 0 : index
    %c0_8 = arith.constant 0 : index
    %10 = vector.load %arg4[%c0_7, %c0_8] : memref<4x128xf32, #tpu.memory_space<vmem>>, vector<4x128xf32>
    %cst_9 = arith.constant dense<0.000000e+00> : vector<4x128xf32>
    %11 = tpu.matmul %9, %10, %cst_9 {dimension_numbers = #tpu.dot_dimension_numbers<[1], [0], [0], [1], [0, 0, 1, 1], [], []>} : vector<4x4xf32>, vector<4x128xf32>, vector<4x128xf32> -> vector<4x128xf32>
    %12 = arith.mulf %0, %11 : vector<4x128xf32>
    %13 = vector.broadcast %1 : vector<1x128xf32> to vector<4x128xf32>
    %14 = arith.mulf %12, %13 : vector<4x128xf32>
    %c0_10 = arith.constant 0 : index
    %c0_11 = arith.constant 0 : index
    %15 = vector.load %arg5[%c0_10, %c0_11] : memref<4x128xf32, #tpu.memory_space<vmem>>, vector<4x128xf32>
    tpu.vector_store %arg5[%c0_10, %c0_11], %14 {strides = array<i32>} : memref<4x128xf32, #tpu.memory_space<vmem>>, vector<4x128xf32>,
    return
  }
  func.func @transform_0(%arg0: i32) -> (i32, i32) {
    %c0_i32 = arith.constant 0 : i32
    %c0_i32_0 = arith.constant 0 : i32
    return %arg0, %c0_i32 : i32, i32
  }
  func.func @transform_1(%arg0: i32) -> (i32, i32) {
    %c0_i32 = arith.constant 0 : i32
    %c0_i32_0 = arith.constant 0 : i32
    %c0_i32_1 = arith.constant 0 : i32
    return %c0_i32, %c0_i32_0 : i32, i32
  }
  func.func @transform_2(%arg0: i32) -> (i32, i32) {
    %c0_i32 = arith.constant 0 : i32
    %c0_i32_0 = arith.constant 0 : i32
    %c0_i32_1 = arith.constant 0 : i32
    return %c0_i32, %c0_i32_0 : i32, i32
  }
  func.func @transform_3(%arg0: i32) -> (i32, i32) {
    %c0_i32 = arith.constant 0 : i32
    %c0_i32_0 = arith.constant 0 : i32
    %c0_i32_1 = arith.constant 0 : i32
    return %c0_i32, %c0_i32_0 : i32, i32
  }
  func.func @transform_4(%arg0: i32) -> (i32, i32) {
    %c0_i32 = arith.constant 0 : i32
    %c0_i32_0 = arith.constant 0 : i32
    return %arg0, %c0_i32 : i32, i32
  }
}

</mosaic_0001>

<bundles_post_ra>
// kernel: tpu_custom_call.1
= control target key start
LH: loop header
LB: loop body
LE: loop exit
PB: predicated region body
PF: predicated region fallthrough
CT: control target
= control target key end

     0   :  { %s238_s0 = inlined_call_operand.vmem [shape: f32[4,128], index: 0, kind: input, shape index: {}]   ;;  %s239_s1 = inlined_call_operand.vmem [shape: f32[1,128], index: 1, kind: input, shape index: {}]   ;;  %s240_s2 = inlined_call_operand.vmem [shape: f32[128,4], index: 2, kind: input, shape index: {}]   ;;  %s241_s3 = inlined_call_operand.vmem [shape: f32[4,128], index: 3, kind: input, shape index: {}]   ;;  %s242_s4 = inlined_call_operand.hbm [shape: f32[4,128], index: 4, kind: output, shape index: {}]  }
   0x1   :  { %v36_v0 = vld [vmem:[%s240_s2 + $0x78] sm:$0xff]  ;;  %v35_v1 = vld [vmem:[%s240_s2 + $0x70] sm:$0xff]  ;;  %v34_v2 = vld [vmem:[%s240_s2 + $0x68] sm:$0xff] }
   0x2   :  { %37 = vmatpush.msra.mxu0 %v36_v0  ;;  %v33_v3 = vld [vmem:[%s240_s2 + $0x60] sm:$0xff]  ;;  %v32_v4 = vld [vmem:[%s240_s2 + $0x58] sm:$0xff] }
   0x4   :  { %38 = vmatpush.msra.mxu0 %v35_v1 }
   0x6   :  { %39 = vmatpush.msra.mxu0 %v34_v2 }
   0x7   :  { %9 = vsyncpa [#allocation3], 0  ;;  %v31_v5 = vld [vmem:[%s240_s2 + $0x50] sm:$0xff]  ;;  %v30_v6 = vld [vmem:[%s240_s2 + $0x48] sm:$0xff]  ;;  %vm74_vm0 = vcmask 1043456   ;;  %vm70_vm3 = vcmask 31744  }
   0x8   :  { %40 = vmatpush.msra.mxu0 %v33_v3  ;;  %v29_v7 = vld [vmem:[%s240_s2 + $0x40] sm:$0xff]  ;;  %v28_v8 = vld [vmem:[%s240_s2 + $0x38] sm:$0xff]  ;;  %v27_v9 = vld [vmem:[%s240_s2 + $0x30] sm:$0xff]  ;;  %s111_s28 = sshll.u32 %s242_s4, 4  ;;  %s112_s28 = int_to_ptr.hbm [resolvable:$true] %s111_s28 }
   0x9   :  { %v26_v10 = vld [vmem:[%s240_s2 + $0x28] sm:$0xff]  ;;  %v25_v11 = vld [vmem:[%s240_s2 + $0x20] sm:$0xff]  ;;  %v24_v12 = vld [vmem:[%s240_s2 + $0x18] sm:$0xff] }
   0xa   :  { %41 = vmatpush.msra.mxu0 %v32_v4  ;;  %v23_v13 = vld [vmem:[%s240_s2 + $0x10] sm:$0xff]  ;;  %v18_v14 = vld [vmem:[%s238_s0] sm:$0xf]  ;;  %v22_v15 = vld [vmem:[%s240_s2 + $0x8] sm:$0xff] }
   0xb   :  { %v21_v16 = vld [vmem:[%s240_s2] sm:$0xff]  ;;  %v20_v17 = vmul.f32 %v18_v14, %v18_v14 }
   0xc   :  { %42 = vmatpush.msra.mxu0 %v31_v5  ;;  %v69_v18 = vld [vmem:[%s241_s3] sm:$0xf]  ;;  %s152_s3 = smov [#allocation2]  }
   0xd   :  { %120 = vmatpush.msk.msra.mxu1 %vm74_vm0, %v69_v18  ;;  %v123_v29 = vld [vmem:[%s239_s1] ss:$0 sm:$0xff]  ;;  %s109_s25 = sshll.u32 %s152_s3, 4  ;;  %s110_s25 = int_to_ptr.vmem [resolvable:$true] %s109_s25 }
   0xe   :  { %43 = vmatpush.msra.mxu0 %v30_v6 }
  0x10   :  { %44 = vmatpush.msra.mxu0 %v29_v7 }
  0x12   :  { %45 = vmatpush.msra.mxu0 %v28_v8 }
  0x14   :  { %46 = vmatpush.msra.mxu0 %v27_v9 }
  0x16   :  { %47 = vmatpush.msra.mxu0 %v26_v10 }
  0x18   :  { %48 = vmatpush.msra.mxu0 %v25_v11 }
  0x1a   :  { %49 = vmatpush.msra.mxu0 %v24_v12 }
  0x1c   :  { %50 = vmatpush.msra.mxu0 %v23_v13 }
  0x1e   :  { %51 = vmatpush.msra.mxu0 %v22_v15 }
  0x20   :  { %52 = vmatpush.msra.mxu0 %v21_v16 }
  0x21   :  { %53 = vmatmul.f32.vlgmr.msra.gmra.mxu0 %v20_v17 }
  0x9e   :  { %v54_v19 = vpop.f32.mrf.mxu0 }
  0x9f   :  { %v57_v20 = vmul.f32 0.03125, %v54_v19 }
  0xa1   :  { %v58_v21 = vadd.f32 1e-05, %v57_v20 }
  0xa3   :  { %124 = vrsqrt.f32 %v58_v21  ;;  %vm65_vm2 = vweird.f32 %v58_v21 }
  0xa9   :  { %v125_v22 = vpop.eup %124 }
  0xaa   :  { %v60_v23 = vmul.f32 %v125_v22, %v58_v21  ;;  %vm66_vm1 = vweird.f32 %v125_v22 }
  0xab   :  { %vm67_vm4 = vmor %vm65_vm2, %vm66_vm1 }
  0xac   :  { %v61_v24 = vmul.f32 %v125_v22, %v60_v23 }
  0xae   :  { %v62_v25 = vmul.f32 0.5, %v61_v24 }
  0xb0   :  { %v63_v26 = vsub.f32 1.5, %v62_v25 }
  0xb2   :  { %v64_v27 = vmul.f32 %v125_v22, %v63_v26 }
  0xb4   :  { %v68_v28 = vsel %vm67_vm4, %v125_v22, %v64_v27 }
  0xb5   :  { %121 = vmatmul.msk.f32.vlgmr.msra.gmra.mxu1 %vm70_vm3, %v68_v28 }
 0x132   :  { %v95_v30 = vpop.f32.mrf.mxu1 }
 0x133   :  { %v98_v31 = vmul.f32 %v95_v30, %v18_v14 }
 0x135   :  { %v102_v32 = vmul.f32 %v123_v29, %v98_v31 }
 0x137   :  { %103 = vst [vmem:[#allocation2] sm:$0xf] %v102_v32 }
 0x138   :  { %114 = dma.vmem_to_hbm [thread:$0]  %s110_s25, 64, %s112_s28, [#allocation3]  }
 0x139   :  { %150 = dma.done.wait [#allocation3], 64  }
 0x13a   :  { %151 = vsyncadd [#allocation3], 4294967232 }
 0x13b   :  { %119 = vsyncpa [#allocation3], 1 }

</bundles_post_ra>
